<compile_context>
chip_gen: v7x
topology: tpu7x:2x2x1
jax: 0.10.0
libtpu: 0.0.40
codegen_flags: <defaults>
</compile_context>

<pallas_src>
import numpy as np
import jax
import jax.numpy as jnp
from jax import lax
from jax.experimental import pallas as pl
from jax.experimental.pallas import tpu as pltpu


# ----------------------------- Pallas kernels ------------------------------

def _sigmoid_kernel(cls_ref, out_ref):
    x = cls_ref[...]
    # sigmoid(x) = 0.5 * tanh(0.5 * x) + 0.5  (single EUP tanh, no f32 divide)
    out_ref[...] = 0.5 * jnp.tanh(0.5 * x) + 0.5


def _make_topk_kernel(k: int, temperature: float):
    inv_t = float(1.0 / temperature)

    def _topk_kernel(cls_ref, out_ref):
        x = cls_ref[...] * jnp.float32(inv_t)                # (n, dim)
        n, dim = x.shape

        # Hoisted: one exp pass and one full sum for the whole loop.
        m0 = jnp.max(x, axis=-1, keepdims=True)
        e0 = jnp.exp(x - m0)                                 # EUP, once
        s0 = jnp.sum(e0, axis=-1, keepdims=True)             # XLU, once
        acc0 = jnp.zeros_like(e0)

        def body(_, carry):
            e, s, acc = carry
            # current argmax value of the remaining entries
            emax = jnp.max(e, axis=-1, keepdims=True)        # XLU reduce #1
            # first-index tie-break (matches torch.topk); iota rematerialized
            col = lax.broadcasted_iota(jnp.int32, (n, dim), 1)
            is_max = e == emax
            idx = jnp.min(jnp.where(is_max, col, dim),
                          axis=-1, keepdims=True)            # XLU reduce #2
            hit = col == idx
            # softmax value at the argmax == emax / running-sum (exact in math:
            # the shift by m0 cancels between numerator and denominator)
            v = emax / s                                     # (n,1) only
            acc = acc + jnp.where(hit, v, 0.0)
            # remove the picked entry: zero it in e and subtract from the sum
            e = jnp.where(hit, 0.0, e)
            s = s - emax
            return e, s, acc

        _, _, out = lax.fori_loop(0, k, body, (e0, s0, acc0),
                                  unroll=(k <= 4))
        out_ref[...] = out

    return _topk_kernel


# ------------------------------ JAX wrapper ---------------------------------

def _row_grid_call(kernel, x):
    """Run a per-row-independent kernel tiled over the latent (sublane) axis."""
    n, dim = x.shape
    # Row block: full array if tiny, else sublane-aligned 8-row tiles so larger
    # num_latents shards across v7x's two TensorCores and stays VMEM-friendly.
    rb = n if n <= 8 else 8
    grid = (pl.cdiv(n, rb),)
    spec = pl.BlockSpec((rb, dim), lambda i: (i, 0))
    return pl.pallas_call(
        kernel,
        out_shape=jax.ShapeDtypeStruct((n, dim), jnp.float32),
        grid=grid,
        in_specs=[spec],
        out_specs=spec,
        compiler_params=pltpu.CompilerParams(
            dimension_semantics=("parallel",)),
    )(x)


class Latents:
    """JAX/Pallas port of big_sleep.Latents (forward only)."""

    def __init__(self, num_latents=15, num_classes=1000, z_dim=128,
                 max_classes=None, class_temperature=2.0, key=None):
        if key is None:
            key = jax.random.PRNGKey(0)
        k1, k2 = jax.random.split(key)
        # torch.zeros(...).normal_(std=1)
        self.normu = jax.random.normal(k1, (num_latents, z_dim), jnp.float32)
        # torch.zeros(...).normal_(mean=-3.9, std=0.3)
        self.cls = -3.9 + 0.3 * jax.random.normal(k2, (num_latents, num_classes),
                                                  jnp.float32)
        assert max_classes is None or (0 < max_classes <= num_classes)
        self.max_classes = max_classes
        self.class_temperature = class_temperature

    def __call__(self):
        if self.max_classes is not None:
            kernel = _make_topk_kernel(self.max_classes, self.class_temperature)
        else:
            kernel = _sigmoid_kernel

        # TODO(synk): in the full big_sleep Model, `classes` immediately feeds
        # BigGAN's class-embedding matmul; fusing this nonlinearity into that
        # matmul's LHS prep would remove this standalone launch entirely.
        classes = _row_grid_call(kernel, self.cls)

        # normu is returned untouched (pure parameter pass-through; glue only).
        return self.normu, classes


# ---------------------------- reference (plain JAX) --------------------------

def _differentiable_topk_ref(x, k, temperature=1.0):
    n, dim = x.shape
    out = jnp.zeros_like(x)
    xc = x
    rows = jnp.arange(n)
    for i in range(k):
        sm = jax.nn.softmax(xc / temperature, axis=-1)
        idx = jnp.argmax(xc, axis=-1)
        v = jnp.max(sm, axis=-1)
        out = out.at[rows, idx].add(v)
        if i != k - 1:
            xc = xc.at[rows, idx].set(-jnp.inf)
    return out


# ----------------------------------- main ------------------------------------

if __name__ == "__main__":
    key = jax.random.PRNGKey(0)

    # Small, forward-consistent shapes: num_latents=8, num_classes=256, z_dim=32.
    NL, NC, ZD = 8, 256, 32

    # Path 1: default (max_classes=None) -> sigmoid(cls)
    m_sig = Latents(num_latents=NL, num_classes=NC, z_dim=ZD,
                    max_classes=None, class_temperature=2.0, key=key)
    normu1, classes1 = m_sig()
    jax.block_until_ready(classes1)
    ref1 = jax.nn.sigmoid(m_sig.cls)
    assert normu1.shape == (NL, ZD) and classes1.shape == (NL, NC)
    assert np.allclose(np.asarray(classes1), np.asarray(ref1), atol=2e-6)

    # Path 2: max_classes=3 -> differentiable_topk(cls, 3, temperature=2.0)
    m_topk = Latents(num_latents=NL, num_classes=NC, z_dim=ZD,
                     max_classes=3, class_temperature=2.0, key=key)
    normu2, classes2 = m_topk()
    jax.block_until_ready(classes2)
    ref2 = _differentiable_topk_ref(m_topk.cls, 3, temperature=2.0)
    assert np.allclose(np.asarray(classes2), np.asarray(ref2), atol=1e-5)

    print("KERNEL_OK")
</pallas_src>

<mosaic_0001>
module attributes {stable_mosaic.version = 11 : i64} {
  func.func @_sigmoid_kernel(%arg0: i32, %arg1: memref<8x256xf32, #tpu.memory_space<vmem>>, %arg2: memref<8x256xf32, #tpu.memory_space<vmem>>) attributes {dimension_semantics = [#tpu.dimension_semantics<parallel>], iteration_bounds = array<i64: 1>, scalar_prefetch = 0 : i64, scratch_operands = 0 : i64, tpu.core_type = #tpu.core_type<tc>, window_params = [{transform_indices = @transform_0, window_bounds = array<i64: 8, 256>}, {transform_indices = @transform_1, window_bounds = array<i64: 8, 256>}]} {
    %c0 = arith.constant 0 : index
    %c0_0 = arith.constant 0 : index
    %0 = vector.load %arg1[%c0, %c0_0] : memref<8x256xf32, #tpu.memory_space<vmem>>, vector<8x256xf32>
    %cst = arith.constant 5.000000e-01 : f32
    %1 = vector.broadcast %cst : f32 to vector<8x256xf32>
    %2 = arith.mulf %1, %0 : vector<8x256xf32>
    %3 = math.tanh %2 : vector<8x256xf32>
    %cst_1 = arith.constant 5.000000e-01 : f32
    %4 = vector.broadcast %cst_1 : f32 to vector<8x256xf32>
    %5 = arith.mulf %4, %3 : vector<8x256xf32>
    %cst_2 = arith.constant 5.000000e-01 : f32
    %6 = vector.broadcast %cst_2 : f32 to vector<8x256xf32>
    %7 = arith.addf %5, %6 : vector<8x256xf32>
    %c0_3 = arith.constant 0 : index
    %c0_4 = arith.constant 0 : index
    %8 = vector.load %arg2[%c0_3, %c0_4] : memref<8x256xf32, #tpu.memory_space<vmem>>, vector<8x256xf32>
    tpu.vector_store %arg2[%c0_3, %c0_4], %7 {strides = array<i32>} : memref<8x256xf32, #tpu.memory_space<vmem>>, vector<8x256xf32>,
    return
  }
  func.func @transform_0(%arg0: i32) -> (i32, i32) {
    %c0_i32 = arith.constant 0 : i32
    %c0_i32_0 = arith.constant 0 : i32
    return %arg0, %c0_i32 : i32, i32
  }
  func.func @transform_1(%arg0: i32) -> (i32, i32) {
    %c0_i32 = arith.constant 0 : i32
    %c0_i32_0 = arith.constant 0 : i32
    return %arg0, %c0_i32 : i32, i32
  }
}

</mosaic_0001>

<bundles_post_ra>
// kernel: tpu_custom_call.1
= control target key start
LH: loop header
LB: loop body
LE: loop exit
PB: predicated region body
PF: predicated region fallthrough
CT: control target
= control target key end

     0   :  { %6 = vsyncpa [#allocation3], 0  ;;  %s138_s0 = inlined_call_operand.hbm [shape: f32[8,256], index: 0, kind: input, shape index: {}]   ;;  %s139_s1 = inlined_call_operand.hbm [shape: f32[8,256], index: 1, kind: output, shape index: {}]  }
   0x1   :  { %7 = vsyncpa [#allocation4], 0  ;;  %s102_s6 = smov [#allocation2]   ;;  %s54_s10 = scalar_lea.hbm %s138_s0, 256 }
   0x2   :  { %s14_s7 = sshll.u32 %s102_s6, 4  ;;  %p55_p0 = scmp.ne.s32.totalorder %s138_s0, %s54_s10  ;;  %s15_s7 = int_to_ptr.vmem [resolvable:$true] %s14_s7 }
   0x3   :  { %p58_p1 = scmp.lt.u32.totalorder %s54_s10, %s138_s0 }
   0x5   :  { %p60_p2 = pnand %p58_p1, %p55_p0 }
   0x7   :  { %63 = shalt.err (!%p60_p2)
}
   0x8   :  { %s64_s15 = scalar_lea.vmem %s15_s7, 256  ;;  %p69_p4 = scmp.lt.s32.totalorder %s15_s7, %s15_s7 }
   0x9   :  { %p65_p3 = scmp.ne.s32.totalorder %s15_s7, %s64_s15  ;;  %p70_p5 = scmp.lt.s32.totalorder %s64_s15, %s64_s15 }
   0xb   :  { %p71_p6 = por %p70_p5, %p69_p4 }
   0xd   :  { %p72_p7 = pnand %p71_p6, %p65_p3 }
   0xf   :  { %75 = shalt.err (!%p72_p7)
}
  0x10   :  { %17 = dma.hbm_to_vmem [thread:$0]  %s138_s0, 256, %s15_s7, [#allocation3]  }
  0x11   :  { %98 = dma.done.wait [#allocation3], 256  }
  0x12   :  { %99 = vsyncadd [#allocation3], 4294967040  ;;  %v21_v0 = vld [vmem:[#allocation2] sm:$0xff]  ;;  %v22_v1 = vld [vmem:[#allocation2 + $0x8] sm:$0xff]  ;;  %s103_s18 = smov [#allocation5]  }
  0x13   :  { %v23_v2 = vmul.f32 0.5, %v21_v0  ;;  %v24_v3 = vmul.f32 0.5, %v22_v1  ;;  %s39_s19 = sshll.u32 %s103_s18, 4  ;;  %s40_s19 = int_to_ptr.vmem [resolvable:$true] %s39_s19 }
  0x14   :  { %s76_s0 = scalar_lea.vmem %s40_s19, 256  ;;  %p81_p9 = scmp.lt.s32.totalorder %s40_s19, %s40_s19 }
  0x15   :  { %50 = vtanh.f32 %v23_v2  ;;  %p77_p8 = scmp.ne.s32.totalorder %s40_s19, %s76_s0  ;;  %p82_p10 = scmp.lt.s32.totalorder %s76_s0, %s76_s0 }
  0x16   :  { %52 = vtanh.f32 %v24_v3 }
  0x17   :  { %p83_p11 = por %p82_p10, %p81_p9 }
  0x19   :  { %p84_p12 = pnand %p83_p11, %p77_p8 }
  0x1f   :  { %v51_v4 = vpop.eup %50 }
  0x20   :  { %v53_v5 = vpop.eup %52  ;;  %v27_v6 = vmul.f32 0.5, %v51_v4 }
  0x21   :  { %v28_v7 = vmul.f32 0.5, %v53_v5 }
  0x22   :  { %v29_v8 = vadd.f32 0.5, %v27_v6 }
  0x23   :  { %v30_v9 = vadd.f32 0.5, %v28_v7 }
  0x24   :  { %31 = vst [vmem:[#allocation5] sm:$0xff] %v29_v8 }
  0x25   :  { %32 = vst [vmem:[#allocation5 + $0x8] sm:$0xff] %v30_v9 }
  0x26   :  { %87 = shalt.err (!%p84_p12)
}
  0x27   :  { %s88_s22 = scalar_lea.hbm %s139_s1, 256 }
  0x28   :  { %p89_p13 = scmp.ne.s32.totalorder %s139_s1, %s88_s22  ;;  %p92_p0 = scmp.lt.u32.totalorder %s88_s22, %s139_s1 }
  0x2a   :  { %p94_p1 = pnand %p92_p0, %p89_p13 }
  0x2c   :  { %97 = shalt.err (!%p94_p1)
}
  0x2d   :  { %42 = dma.vmem_to_hbm [thread:$0]  %s40_s19, 256, %s139_s1, [#allocation4]  }
  0x2e   :  { %100 = dma.done.wait [#allocation4], 256  }
  0x2f   :  { %101 = vsyncadd [#allocation4], 4294967040 }
  0x30   :  { %46 = vsyncpa [#allocation3], 1 }
  0x31   :  { %47 = vsyncpa [#allocation4], 1 }

</bundles_post_ra>
